<compile_context>
chip_gen: v7x
topology: tpu7x:2x2x1
jax: 0.10.0
libtpu: 0.0.40
codegen_flags: <defaults>
</compile_context>

<pallas_src>
import functools

import numpy as np

import jax
import jax.numpy as jnp
from jax.experimental import pallas as pl
from jax.experimental.pallas import tpu as pltpu


# ---------------------------------------------------------------------------
# Parameter "layout glue": express the convs (and the fused pool) as matmuls.
# ---------------------------------------------------------------------------
def _conv1_as_matmul(w1, b1, S, L1):
    """W1big[s, c*L1 + l] = w1[c, 0, s-l] for 0 <= s-l < K  (h1 = relu(x @ W1big + b))."""
    F, _, K = w1.shape
    cg, lg, jg = np.meshgrid(np.arange(F), np.arange(L1), np.arange(K), indexing='ij')
    rows = (lg + jg).reshape(-1)
    cols = (cg * L1 + lg).reshape(-1)
    vals = w1[cg, 0, jg].reshape(-1).astype(jnp.float32)
    W1big = jnp.zeros((S, F * L1), jnp.float32).at[rows, cols].set(vals)
    b1big = jnp.repeat(b1.astype(jnp.float32), L1).reshape(1, F * L1)
    return W1big.astype(jnp.bfloat16), b1big


def _conv2_pool_as_matmul(w2, b2, L1, Lp):
    """Single fused conv2 matrix: even output timesteps in columns [0, F*Lp),
    odd output timesteps in columns [F*Lp, 2*F*Lp) (PyTorch Flatten order f*Lp+lp).
    MaxPool1d(2) then reduces to max of the two column halves."""
    F, Fin, K = w2.shape
    fg, cg, lpg, jg = np.meshgrid(np.arange(F), np.arange(Fin), np.arange(Lp),
                                  np.arange(K), indexing='ij')
    cols = (fg * Lp + lpg).reshape(-1)
    rows_e = (cg * L1 + 2 * lpg + jg).reshape(-1)
    vals = w2[fg, cg, jg].reshape(-1).astype(jnp.float32)
    W2 = jnp.zeros((Fin * L1, 2 * F * Lp), jnp.float32)
    W2 = W2.at[rows_e, cols].set(vals)                       # even timesteps
    W2 = W2.at[rows_e + 1, cols + F * Lp].set(vals)          # odd timesteps
    b2p = jnp.repeat(b2.astype(jnp.float32), Lp).reshape(1, F * Lp)
    return W2.astype(jnp.bfloat16), b2p


def _pick_batch_block(Bp, T, per_row_bytes, target=512, budget_bytes=24 << 20):
    """Bp is a multiple of 8.  Pick the largest multiple-of-8 divisor of Bp that
    (a) keeps the T*Bb-row intermediate footprint under ~budget_bytes (fits v7x's
    64 MiB/TC with headroom), (b) is <= target, and (c) leaves grid >= 2 steps
    when Bp >= 16 so both v7x TensorCores get work (negligible extra per-step
    overhead on single-TC v5e/v6e)."""
    if Bp <= 8:
        return Bp
    fit = max(((budget_bytes // max(T * per_row_bytes, 1)) // 8) * 8, 8)
    cap = max(min(target, fit, max(Bp // 2, 8)), 8)
    best = 8
    for bb in range(8, min(cap, Bp) + 1, 8):
        if Bp % bb == 0:
            best = bb
    return best


# ---------------------------------------------------------------------------
# Kernel body (one grid step = one batch tile, all T timesteps).
# ---------------------------------------------------------------------------
def _cnn_lstm_kernel(x_ref, w1_ref, b1_ref, w2_ref, b2_ref,
                     wih_ref, whh_ref, blstm_ref,
                     wfc1_ref, bfc1_ref, wfc2_ref, bfc2_ref,
                     out_ref, *, seq_len):
    T = seq_len
    _, Bb, S = x_ref.shape
    H = whh_ref.shape[0]
    FLp = b2_ref.shape[1]                                   # pooled feature width F*Lp
    N = T * Bb                                              # rows t-major: n = t*Bb + b

    x = x_ref[...].astype(jnp.bfloat16).reshape(N, S)       # bf16 MXU operand

    # conv1 + ReLU as a single lane-dense MXU matmul: (N, S) @ (S, F*L1)
    h1 = jnp.maximum(
        jnp.dot(x, w1_ref[...], preferred_element_type=jnp.float32) + b1_ref[...], 0.0)

    # conv2 (even||odd output timesteps fused into ONE matmul) + MaxPool1d(2):
    # element-wise max of the two 48-lane halves, then bias + ReLU.
    g2 = jnp.dot(h1.astype(jnp.bfloat16), w2_ref[...],
                 preferred_element_type=jnp.float32)        # (N, 2*F*Lp)
    pool = jnp.maximum(jnp.maximum(g2[:, :FLp], g2[:, FLp:]) + b2_ref[...], 0.0)

    # LSTM input projection for ALL timesteps at once: (N, F*Lp) @ (F*Lp, 4H)
    zx = jnp.dot(pool.astype(jnp.bfloat16), wih_ref[...],
                 preferred_element_type=jnp.float32) + blstm_ref[...]

    # LSTM recurrence (PyTorch gate order [i, f, g, o]); only h_{T-1} is needed.
    whh = whh_ref[...]                                      # bf16 (H, 4H), loop-invariant
    h = jnp.zeros((Bb, H), jnp.float32)
    c = jnp.zeros((Bb, H), jnp.float32)
    # TODO(synk): for T >> 32 switch to lax.fori_loop(..., unroll=4) to bound code
    #             size / vreg live ranges; static unroll is right at T=8.
    # TODO(synk): hold whh resident in MXU staging across the T steps via
    #             pltpu.matmul_push_rhs / matmul_acc_lhs / matmul_pop.
    for t in range(T):                                      # static, 8-aligned sublane slice
        gates = zx[t * Bb:(t + 1) * Bb, :] + jnp.dot(
            h.astype(jnp.bfloat16), whh, preferred_element_type=jnp.float32)
        sig = jax.nn.sigmoid(gates)                         # full 4H=128-lane EUP pass
        tg = jnp.tanh(gates)                                # full-width; slices hit XLU only
        i_g = sig[:, 0:H]
        f_g = sig[:, H:2 * H]
        g_g = tg[:, 2 * H:3 * H]
        o_g = sig[:, 3 * H:4 * H]
        c = f_g * c + i_g * g_g
        h = o_g * jnp.tanh(c)

    # dropout(p=0.6): identity (inference semantics).
    # TODO(synk): training-mode dropout would need pltpu.prng_seed / prng_random_bits.
    z = jnp.maximum(
        jnp.dot(h.astype(jnp.bfloat16), wfc1_ref[...],
                preferred_element_type=jnp.float32) + bfc1_ref[...], 0.0)
    # fc2 (H -> 1): VPU multiply + lane reduction, no degenerate 1-wide MXU matmul.
    y = jnp.sum(z * wfc2_ref[...], axis=-1, keepdims=True) + bfc2_ref[...]
    out_ref[...] = y.astype(out_ref.dtype)


# ---------------------------------------------------------------------------
# Wrapper
# ---------------------------------------------------------------------------
def cnn_lstm_forward(x, params):
    """x: (B, T, n_steps, 1) float32 — same input convention as the PyTorch module."""
    B, T, S, _ = x.shape
    F, _, K = params['conv1_w'].shape
    H = params['fc1_w'].shape[0]
    L1 = S - K + 1
    L2 = L1 - K + 1
    Lp = L2 // 2
    D = F * Lp

    # ---- plain-JAX layout glue (no compute moved out of the kernel path) ----
    # TODO(synk): lane-dense x repack ((B, T*S) rows + block-diagonal W1/W2/wih)
    #             would remove this transpose and the 16-wide minor dim of x.
    x_k = jnp.transpose(x[..., 0], (1, 0, 2)).astype(jnp.float32)      # (T, B, S): n = t*B + b

    # Pad batch to a multiple of 8 so every batch tile / gate slice is sublane-aligned.
    Bp = ((B + 7) // 8) * 8
    if Bp != B:
        x_k = jnp.pad(x_k, ((0, 0), (0, Bp - B), (0, 0)))

    W1big, b1big = _conv1_as_matmul(params['conv1_w'], params['conv1_b'], S, L1)
    W2, b2p = _conv2_pool_as_matmul(params['conv2_w'], params['conv2_b'], L1, Lp)
    wih = params['w_ih'].T.astype(jnp.bfloat16)                        # (F*Lp, 4H) Flatten order
    whh = params['w_hh'].T.astype(jnp.bfloat16)                        # (H, 4H)
    blstm = (params['b_ih'] + params['b_hh']).reshape(1, 4 * H).astype(jnp.float32)
    wfc1 = params['fc1_w'].T.astype(jnp.bfloat16)                      # (H, H)
    bfc1 = params['fc1_b'].reshape(1, H).astype(jnp.float32)
    wfc2 = params['fc2_w'].reshape(1, H).astype(jnp.float32)           # row vector (VPU fc2)
    bfc2 = params['fc2_b'].reshape(1, 1).astype(jnp.float32)

    # f32 intermediates (h1/g2/pool/zx) + bf16 copies, per t-major row.
    per_row_bytes = 4 * (S + F * L1 + 3 * D + 4 * H) + 2 * (S + F * L1 + D)
    Bb = _pick_batch_block(Bp, T, per_row_bytes)
    grid = (Bp // Bb,)
    vmem_limit = int(min(max(2 * T * Bb * per_row_bytes + (8 << 20), 32 << 20), 48 << 20))

    ins = (x_k, W1big, b1big, W2, b2p, wih, whh, blstm, wfc1, bfc1, wfc2, bfc2)

    def full_spec(a):
        nd = a.ndim
        return pl.BlockSpec(a.shape, lambda i, _nd=nd: (0,) * _nd)     # fetched once (constant idx)

    in_specs = [pl.BlockSpec((T, Bb, S), lambda i: (0, i, 0))] + [full_spec(a) for a in ins[1:]]

    out = pl.pallas_call(
        functools.partial(_cnn_lstm_kernel, seq_len=T),
        out_shape=jax.ShapeDtypeStruct((Bp, 1), jnp.float32),
        grid=grid,
        in_specs=in_specs,
        out_specs=pl.BlockSpec((Bb, 1), lambda i: (i, 0)),
        compiler_params=pltpu.CompilerParams(
            dimension_semantics=("parallel",),     # shards the batch grid across TCs on v7x
            vmem_limit_bytes=vmem_limit),
    )(*ins)
    return out[:B]


# ---------------------------------------------------------------------------
# Synthetic parameters (PyTorch layout) + pure-JAX reference for verification.
# ---------------------------------------------------------------------------
def init_params(key, n_steps, n_filters, n_kernel, n_nodes):
    D = n_filters * ((n_steps - 2 * (n_kernel - 1)) // 2)
    ks = jax.random.split(key, 12)

    def u(k, shape, scale):
        return jax.random.uniform(k, shape, jnp.float32, minval=-scale, maxval=scale)

    return {
        'conv1_w': u(ks[0], (n_filters, 1, n_kernel), 0.5),
        'conv1_b': u(ks[1], (n_filters,), 0.5),
        'conv2_w': u(ks[2], (n_filters, n_filters, n_kernel), 0.25),
        'conv2_b': u(ks[3], (n_filters,), 0.25),
        'w_ih':   u(ks[4], (4 * n_nodes, D), 0.15),
        'w_hh':   u(ks[5], (4 * n_nodes, n_nodes), 0.15),
        'b_ih':   u(ks[6], (4 * n_nodes,), 0.15),
        'b_hh':   u(ks[7], (4 * n_nodes,), 0.15),
        'fc1_w':  u(ks[8], (n_nodes, n_nodes), 0.18),
        'fc1_b':  u(ks[9], (n_nodes,), 0.18),
        'fc2_w':  u(ks[10], (1, n_nodes), 0.18),
        'fc2_b':  u(ks[11], (1,), 0.18),
    }


def reference_forward(x, p):
    """Pure-JAX mirror of the PyTorch forward (NCW convs), f32 HIGHEST precision."""
    B, T, S, _ = x.shape
    F = p['conv1_w'].shape[0]
    H = p['fc1_w'].shape[0]
    hi = jax.lax.Precision.HIGHEST

    xc = jnp.transpose(x.reshape(B * T, S, 1), (0, 2, 1))            # (N, 1, S)

    def conv1d(inp, w, b):
        out = jax.lax.conv_general_dilated(
            inp, w, window_strides=(1,), padding='VALID',
            dimension_numbers=('NCH', 'OIH', 'NCH'), precision=hi)
        return out + b[None, :, None]

    h1 = jax.nn.relu(conv1d(xc, p['conv1_w'], p['conv1_b']))
    h2 = jax.nn.relu(conv1d(h1, p['conv2_w'], p['conv2_b']))
    L2 = h2.shape[-1]
    Lp = L2 // 2
    pool = jnp.max(h2[:, :, :2 * Lp].reshape(B * T, F, Lp, 2), axis=-1)
    feats = pool.reshape(B, T, F * Lp)

    h = jnp.zeros((B, H), jnp.float32)
    c = jnp.zeros((B, H), jnp.float32)
    for t in range(T):
        g = (jnp.dot(feats[:, t, :], p['w_ih'].T, precision=hi)
             + jnp.dot(h, p['w_hh'].T, precision=hi)
             + p['b_ih'] + p['b_hh'])
        i_g = jax.nn.sigmoid(g[:, :H])
        f_g = jax.nn.sigmoid(g[:, H:2 * H])
        g_g = jnp.tanh(g[:, 2 * H:3 * H])
        o_g = jax.nn.sigmoid(g[:, 3 * H:])
        c = f_g * c + i_g * g_g
        h = o_g * jnp.tanh(c)

    z = jax.nn.relu(jnp.dot(h, p['fc1_w'].T, precision=hi) + p['fc1_b'])
    return jnp.dot(z, p['fc2_w'].T, precision=hi) + p['fc2_b']


if __name__ == "__main__":
    config = {'n_steps': 16, 'n_filters': 8, 'n_kernel': 3, 'n_nodes': 32}
    B, T = 2, 8

    key = jax.random.PRNGKey(0)
    kx, kp = jax.random.split(key)
    x = jax.random.normal(kx, (B, T, config['n_steps'], 1), dtype=jnp.float32)
    params = init_params(kp, **config)

    out = jax.block_until_ready(cnn_lstm_forward(x, params))
    ref = jax.block_until_ready(reference_forward(x, params))

    assert out.shape == (B, 1), out.shape
    assert bool(jnp.all(jnp.isfinite(out)))
    # Tolerance documents bf16 MXU operands (kernel) vs f32 Precision.HIGHEST reference.
    assert bool(jnp.allclose(out, ref, rtol=2e-2, atol=2e-2)), (out, ref)
    print("KERNEL_OK")
</pallas_src>

<mosaic_0001>
module attributes {stable_mosaic.version = 11 : i64} {
  func.func @_cnn_lstm_kernel(%arg0: i32, %arg1: memref<8x8x16xf32, #tpu.memory_space<vmem>>, %arg2: memref<16x112xbf16, #tpu.memory_space<vmem>>, %arg3: memref<1x112xf32, #tpu.memory_space<vmem>>, %arg4: memref<112x96xbf16, #tpu.memory_space<vmem>>, %arg5: memref<1x48xf32, #tpu.memory_space<vmem>>, %arg6: memref<48x128xbf16, #tpu.memory_space<vmem>>, %arg7: memref<32x128xbf16, #tpu.memory_space<vmem>>, %arg8: memref<1x128xf32, #tpu.memory_space<vmem>>, %arg9: memref<32x32xbf16, #tpu.memory_space<vmem>>, %arg10: memref<1x32xf32, #tpu.memory_space<vmem>>, %arg11: memref<1x32xf32, #tpu.memory_space<vmem>>, %arg12: memref<1x1xf32, #tpu.memory_space<vmem>>, %arg13: memref<8x1xf32, #tpu.memory_space<vmem>>) attributes {dimension_semantics = [#tpu.dimension_semantics<parallel>], iteration_bounds = array<i64: 1>, scalar_prefetch = 0 : i64, scratch_operands = 0 : i64, tpu.core_type = #tpu.core_type<tc>, window_params = [{transform_indices = @transform_0, window_bounds = array<i64: 8, 8, 16>}, {pipeline_mode = #tpu.pipeline_mode<synchronous>, transform_indices = @transform_1, window_bounds = array<i64: 16, 112>}, {pipeline_mode = #tpu.pipeline_mode<synchronous>, transform_indices = @transform_2, window_bounds = array<i64: 1, 112>}, {pipeline_mode = #tpu.pipeline_mode<synchronous>, transform_indices = @transform_3, window_bounds = array<i64: 112, 96>}, {pipeline_mode = #tpu.pipeline_mode<synchronous>, transform_indices = @transform_4, window_bounds = array<i64: 1, 48>}, {pipeline_mode = #tpu.pipeline_mode<synchronous>, transform_indices = @transform_5, window_bounds = array<i64: 48, 128>}, {pipeline_mode = #tpu.pipeline_mode<synchronous>, transform_indices = @transform_6, window_bounds = array<i64: 32, 128>}, {pipeline_mode = #tpu.pipeline_mode<synchronous>, transform_indices = @transform_7, window_bounds = array<i64: 1, 128>}, {pipeline_mode = #tpu.pipeline_mode<synchronous>, transform_indices = @transform_8, window_bounds = array<i64: 32, 32>}, {pipeline_mode = #tpu.pipeline_mode<synchronous>, transform_indices = @transform_9, window_bounds = array<i64: 1, 32>}, {pipeline_mode = #tpu.pipeline_mode<synchronous>, transform_indices = @transform_10, window_bounds = array<i64: 1, 32>}, {pipeline_mode = #tpu.pipeline_mode<synchronous>, transform_indices = @transform_11, window_bounds = array<i64: 1, 1>}, {transform_indices = @transform_12, window_bounds = array<i64: 8, 1>}]} {
    %c0 = arith.constant 0 : index
    %c0_0 = arith.constant 0 : index
    %c0_1 = arith.constant 0 : index
    %0 = vector.load %arg1[%c0, %c0_0, %c0_1] : memref<8x8x16xf32, #tpu.memory_space<vmem>>, vector<8x8x16xf32>
    %1 = arith.truncf %0 : vector<8x8x16xf32> to vector<8x8x16xbf16>
    %2 = vector.shape_cast %1 : vector<8x8x16xbf16> to vector<64x16xbf16>
    %c0_2 = arith.constant 0 : index
    %c0_3 = arith.constant 0 : index
    %3 = vector.load %arg2[%c0_2, %c0_3] : memref<16x112xbf16, #tpu.memory_space<vmem>>, vector<16x112xbf16>
    %cst = arith.constant dense<0.000000e+00> : vector<64x112xf32>
    %4 = tpu.matmul %2, %3, %cst {dimension_numbers = #tpu.dot_dimension_numbers<[1], [0], [0], [1], [0, 0, 1, 1], [], []>} : vector<64x16xbf16>, vector<16x112xbf16>, vector<64x112xf32> -> vector<64x112xf32>
    %c0_4 = arith.constant 0 : index
    %c0_5 = arith.constant 0 : index
    %5 = vector.load %arg3[%c0_4, %c0_5] : memref<1x112xf32, #tpu.memory_space<vmem>>, vector<1x112xf32>
    %6 = vector.broadcast %5 : vector<1x112xf32> to vector<64x112xf32>
    %7 = arith.addf %4, %6 : vector<64x112xf32>
    %cst_6 = arith.constant 0.000000e+00 : f32
    %8 = vector.broadcast %cst_6 : f32 to vector<64x112xf32>
    %9 = arith.maximumf %7, %8 : vector<64x112xf32>
    %10 = arith.truncf %9 : vector<64x112xf32> to vector<64x112xbf16>
    %c0_7 = arith.constant 0 : index
    %c0_8 = arith.constant 0 : index
    %11 = vector.load %arg4[%c0_7, %c0_8] : memref<112x96xbf16, #tpu.memory_space<vmem>>, vector<112x96xbf16>
    %cst_9 = arith.constant dense<0.000000e+00> : vector<64x96xf32>
    %12 = tpu.matmul %10, %11, %cst_9 {dimension_numbers = #tpu.dot_dimension_numbers<[1], [0], [0], [1], [0, 0, 1, 1], [], []>} : vector<64x112xbf16>, vector<112x96xbf16>, vector<64x96xf32> -> vector<64x96xf32>
    %13 = vector.extract_strided_slice %12 {offsets = [0, 0], sizes = [64, 48], strides = [1, 1]} : vector<64x96xf32> to vector<64x48xf32>
    %14 = vector.extract_strided_slice %12 {offsets = [0, 48], sizes = [64, 48], strides = [1, 1]} : vector<64x96xf32> to vector<64x48xf32>
    %15 = arith.maximumf %13, %14 : vector<64x48xf32>
    %c0_10 = arith.constant 0 : index
    %c0_11 = arith.constant 0 : index
    %16 = vector.load %arg5[%c0_10, %c0_11] : memref<1x48xf32, #tpu.memory_space<vmem>>, vector<1x48xf32>
    %17 = vector.broadcast %16 : vector<1x48xf32> to vector<64x48xf32>
    %18 = arith.addf %15, %17 : vector<64x48xf32>
    %cst_12 = arith.constant 0.000000e+00 : f32
    %19 = vector.broadcast %cst_12 : f32 to vector<64x48xf32>
    %20 = arith.maximumf %18, %19 : vector<64x48xf32>
    %21 = arith.truncf %20 : vector<64x48xf32> to vector<64x48xbf16>
    %c0_13 = arith.constant 0 : index
    %c0_14 = arith.constant 0 : index
    %22 = vector.load %arg6[%c0_13, %c0_14] : memref<48x128xbf16, #tpu.memory_space<vmem>>, vector<48x128xbf16>
    %cst_15 = arith.constant dense<0.000000e+00> : vector<64x128xf32>
    %23 = tpu.matmul %21, %22, %cst_15 {dimension_numbers = #tpu.dot_dimension_numbers<[1], [0], [0], [1], [0, 0, 1, 1], [], []>} : vector<64x48xbf16>, vector<48x128xbf16>, vector<64x128xf32> -> vector<64x128xf32>
    %c0_16 = arith.constant 0 : index
    %c0_17 = arith.constant 0 : index
    %24 = vector.load %arg8[%c0_16, %c0_17] : memref<1x128xf32, #tpu.memory_space<vmem>>, vector<1x128xf32>
    %25 = vector.broadcast %24 : vector<1x128xf32> to vector<64x128xf32>
    %26 = arith.addf %23, %25 : vector<64x128xf32>
    %c0_18 = arith.constant 0 : index
    %c0_19 = arith.constant 0 : index
    %27 = vector.load %arg7[%c0_18, %c0_19] : memref<32x128xbf16, #tpu.memory_space<vmem>>, vector<32x128xbf16>
    %cst_20 = arith.constant 0.000000e+00 : f32
    %28 = vector.broadcast %cst_20 : f32 to vector<8x32xf32>
    %cst_21 = arith.constant 0.000000e+00 : f32
    %29 = vector.broadcast %cst_21 : f32 to vector<8x32xf32>
    %30 = vector.extract_strided_slice %26 {offsets = [0, 0], sizes = [8, 128], strides = [1, 1]} : vector<64x128xf32> to vector<8x128xf32>
    %31 = arith.truncf %28 : vector<8x32xf32> to vector<8x32xbf16>
    %cst_22 = arith.constant dense<0.000000e+00> : vector<8x128xf32>
    %32 = tpu.matmul %31, %27, %cst_22 {dimension_numbers = #tpu.dot_dimension_numbers<[1], [0], [0], [1], [0, 0, 1, 1], [], []>} : vector<8x32xbf16>, vector<32x128xbf16>, vector<8x128xf32> -> vector<8x128xf32>
    %33 = arith.addf %30, %32 : vector<8x128xf32>
    %34 = arith.negf %33 : vector<8x128xf32>
    %35 = math.exp %34 : vector<8x128xf32>
    %cst_23 = arith.constant 1.000000e+00 : f32
    %36 = vector.broadcast %cst_23 : f32 to vector<8x128xf32>
    %37 = arith.addf %36, %35 : vector<8x128xf32>
    %38 = arith.divf %36, %37 : vector<8x128xf32>
    %39 = math.tanh %33 : vector<8x128xf32>
    %40 = vector.extract_strided_slice %38 {offsets = [0, 0], sizes = [8, 32], strides = [1, 1]} : vector<8x128xf32> to vector<8x32xf32>
    %41 = vector.extract_strided_slice %38 {offsets = [0, 32], sizes = [8, 32], strides = [1, 1]} : vector<8x128xf32> to vector<8x32xf32>
    %42 = vector.extract_strided_slice %39 {offsets = [0, 64], sizes = [8, 32], strides = [1, 1]} : vector<8x128xf32> to vector<8x32xf32>
    %43 = vector.extract_strided_slice %38 {offsets = [0, 96], sizes = [8, 32], strides = [1, 1]} : vector<8x128xf32> to vector<8x32xf32>
    %44 = arith.mulf %41, %29 : vector<8x32xf32>
    %45 = arith.mulf %40, %42 : vector<8x32xf32>
    %46 = arith.addf %44, %45 : vector<8x32xf32>
    %47 = math.tanh %46 : vector<8x32xf32>
    %48 = arith.mulf %43, %47 : vector<8x32xf32>
    %49 = vector.extract_strided_slice %26 {offsets = [8, 0], sizes = [8, 128], strides = [1, 1]} : vector<64x128xf32> to vector<8x128xf32>
    %50 = arith.truncf %48 : vector<8x32xf32> to vector<8x32xbf16>
    %cst_24 = arith.constant dense<0.000000e+00> : vector<8x128xf32>
    %51 = tpu.matmul %50, %27, %cst_24 {dimension_numbers = #tpu.dot_dimension_numbers<[1], [0], [0], [1], [0, 0, 1, 1], [], []>} : vector<8x32xbf16>, vector<32x128xbf16>, vector<8x128xf32> -> vector<8x128xf32>
    %52 = arith.addf %49, %51 : vector<8x128xf32>
    %53 = arith.negf %52 : vector<8x128xf32>
    %54 = math.exp %53 : vector<8x128xf32>
    %cst_25 = arith.constant 1.000000e+00 : f32
    %55 = vector.broadcast %cst_25 : f32 to vector<8x128xf32>
    %56 = arith.addf %55, %54 : vector<8x128xf32>
    %57 = arith.divf %55, %56 : vector<8x128xf32>
    %58 = math.tanh %52 : vector<8x128xf32>
    %59 = vector.extract_strided_slice %57 {offsets = [0, 0], sizes = [8, 32], strides = [1, 1]} : vector<8x128xf32> to vector<8x32xf32>
    %60 = vector.extract_strided_slice %57 {offsets = [0, 32], sizes = [8, 32], strides = [1, 1]} : vector<8x128xf32> to vector<8x32xf32>
    %61 = vector.extract_strided_slice %58 {offsets = [0, 64], sizes = [8, 32], strides = [1, 1]} : vector<8x128xf32> to vector<8x32xf32>
    %62 = vector.extract_strided_slice %57 {offsets = [0, 96], sizes = [8, 32], strides = [1, 1]} : vector<8x128xf32> to vector<8x32xf32>
    %63 = arith.mulf %60, %46 : vector<8x32xf32>
    %64 = arith.mulf %59, %61 : vector<8x32xf32>
    %65 = arith.addf %63, %64 : vector<8x32xf32>
    %66 = math.tanh %65 : vector<8x32xf32>
    %67 = arith.mulf %62, %66 : vector<8x32xf32>
    %68 = vector.extract_strided_slice %26 {offsets = [16, 0], sizes = [8, 128], strides = [1, 1]} : vector<64x128xf32> to vector<8x128xf32>
    %69 = arith.truncf %67 : vector<8x32xf32> to vector<8x32xbf16>
    %cst_26 = arith.constant dense<0.000000e+00> : vector<8x128xf32>
    %70 = tpu.matmul %69, %27, %cst_26 {dimension_numbers = #tpu.dot_dimension_numbers<[1], [0], [0], [1], [0, 0, 1, 1], [], []>} : vector<8x32xbf16>, vector<32x128xbf16>, vector<8x128xf32> -> vector<8x128xf32>
    %71 = arith.addf %68, %70 : vector<8x128xf32>
    %72 = arith.negf %71 : vector<8x128xf32>
    %73 = math.exp %72 : vector<8x128xf32>
    %cst_27 = arith.constant 1.000000e+00 : f32
    %74 = vector.broadcast %cst_27 : f32 to vector<8x128xf32>
    %75 = arith.addf %74, %73 : vector<8x128xf32>
    %76 = arith.divf %74, %75 : vector<8x128xf32>
    %77 = math.tanh %71 : vector<8x128xf32>
    %78 = vector.extract_strided_slice %76 {offsets = [0, 0], sizes = [8, 32], strides = [1, 1]} : vector<8x128xf32> to vector<8x32xf32>
    %79 = vector.extract_strided_slice %76 {offsets = [0, 32], sizes = [8, 32], strides = [1, 1]} : vector<8x128xf32> to vector<8x32xf32>
    %80 = vector.extract_strided_slice %77 {offsets = [0, 64], sizes = [8, 32], strides = [1, 1]} : vector<8x128xf32> to vector<8x32xf32>
    %81 = vector.extract_strided_slice %76 {offsets = [0, 96], sizes = [8, 32], strides = [1, 1]} : vector<8x128xf32> to vector<8x32xf32>
    %82 = arith.mulf %79, %65 : vector<8x32xf32>
    %83 = arith.mulf %78, %80 : vector<8x32xf32>
    %84 = arith.addf %82, %83 : vector<8x32xf32>
    %85 = math.tanh %84 : vector<8x32xf32>
    %86 = arith.mulf %81, %85 : vector<8x32xf32>
    %87 = vector.extract_strided_slice %26 {offsets = [24, 0], sizes = [8, 128], strides = [1, 1]} : vector<64x128xf32> to vector<8x128xf32>
    %88 = arith.truncf %86 : vector<8x32xf32> to vector<8x32xbf16>
    %cst_28 = arith.constant dense<0.000000e+00> : vector<8x128xf32>
    %89 = tpu.matmul %88, %27, %cst_28 {dimension_numbers = #tpu.dot_dimension_numbers<[1], [0], [0], [1], [0, 0, 1, 1], [], []>} : vector<8x32xbf16>, vector<32x128xbf16>, vector<8x128xf32> -> vector<8x128xf32>
    %90 = arith.addf %87, %89 : vector<8x128xf32>
    %91 = arith.negf %90 : vector<8x128xf32>
    %92 = math.exp %91 : vector<8x128xf32>
    %cst_29 = arith.constant 1.000000e+00 : f32
    %93 = vector.broadcast %cst_29 : f32 to vector<8x128xf32>
    %94 = arith.addf %93, %92 : vector<8x128xf32>
    %95 = arith.divf %93, %94 : vector<8x128xf32>
    %96 = math.tanh %90 : vector<8x128xf32>
    %97 = vector.extract_strided_slice %95 {offsets = [0, 0], sizes = [8, 32], strides = [1, 1]} : vector<8x128xf32> to vector<8x32xf32>
    %98 = vector.extract_strided_slice %95 {offsets = [0, 32], sizes = [8, 32], strides = [1, 1]} : vector<8x128xf32> to vector<8x32xf32>
    %99 = vector.extract_strided_slice %96 {offsets = [0, 64], sizes = [8, 32], strides = [1, 1]} : vector<8x128xf32> to vector<8x32xf32>
    %100 = vector.extract_strided_slice %95 {offsets = [0, 96], sizes = [8, 32], strides = [1, 1]} : vector<8x128xf32> to vector<8x32xf32>
    %101 = arith.mulf %98, %84 : vector<8x32xf32>
    %102 = arith.mulf %97, %99 : vector<8x32xf32>
    %103 = arith.addf %101, %102 : vector<8x32xf32>
    %104 = math.tanh %103 : vector<8x32xf32>
    %105 = arith.mulf %100, %104 : vector<8x32xf32>
    %106 = vector.extract_strided_slice %26 {offsets = [32, 0], sizes = [8, 128], strides = [1, 1]} : vector<64x128xf32> to vector<8x128xf32>
    %107 = arith.truncf %105 : vector<8x32xf32> to vector<8x32xbf16>
    %cst_30 = arith.constant dense<0.000000e+00> : vector<8x128xf32>
    %108 = tpu.matmul %107, %27, %cst_30 {dimension_numbers = #tpu.dot_dimension_numbers<[1], [0], [0], [1], [0, 0, 1, 1], [], []>} : vector<8x32xbf16>, vector<32x128xbf16>, vector<8x128xf32> -> vector<8x128xf32>
    %109 = arith.addf %106, %108 : vector<8x128xf32>
    %110 = arith.negf %109 : vector<8x128xf32>
    %111 = math.exp %110 : vector<8x128xf32>
    %cst_31 = arith.constant 1.000000e+00 : f32
    %112 = vector.broadcast %cst_31 : f32 to vector<8x128xf32>
    %113 = arith.addf %112, %111 : vector<8x128xf32>
    %114 = arith.divf %112, %113 : vector<8x128xf32>
    %115 = math.tanh %109 : vector<8x128xf32>
    %116 = vector.extract_strided_slice %114 {offsets = [0, 0], sizes = [8, 32], strides = [1, 1]} : vector<8x128xf32> to vector<8x32xf32>
    %117 = vector.extract_strided_slice %114 {offsets = [0, 32], sizes = [8, 32], strides = [1, 1]} : vector<8x128xf32> to vector<8x32xf32>
    %118 = vector.extract_strided_slice %115 {offsets = [0, 64], sizes = [8, 32], strides = [1, 1]} : vector<8x128xf32> to vector<8x32xf32>
    %119 = vector.extract_strided_slice %114 {offsets = [0, 96], sizes = [8, 32], strides = [1, 1]} : vector<8x128xf32> to vector<8x32xf32>
    %120 = arith.mulf %117, %103 : vector<8x32xf32>
    %121 = arith.mulf %116, %118 : vector<8x32xf32>
    %122 = arith.addf %120, %121 : vector<8x32xf32>
    %123 = math.tanh %122 : vector<8x32xf32>
    %124 = arith.mulf %119, %123 : vector<8x32xf32>
    %125 = vector.extract_strided_slice %26 {offsets = [40, 0], sizes = [8, 128], strides = [1, 1]} : vector<64x128xf32> to vector<8x128xf32>
    %126 = arith.truncf %124 : vector<8x32xf32> to vector<8x32xbf16>
    %cst_32 = arith.constant dense<0.000000e+00> : vector<8x128xf32>
    %127 = tpu.matmul %126, %27, %cst_32 {dimension_numbers = #tpu.dot_dimension_numbers<[1], [0], [0], [1], [0, 0, 1, 1], [], []>} : vector<8x32xbf16>, vector<32x128xbf16>, vector<8x128xf32> -> vector<8x128xf32>
    %128 = arith.addf %125, %127 : vector<8x128xf32>
    %129 = arith.negf %128 : vector<8x128xf32>
    %130 = math.exp %129 : vector<8x128xf32>
    %cst_33 = arith.constant 1.000000e+00 : f32
    %131 = vector.broadcast %cst_33 : f32 to vector<8x128xf32>
    %132 = arith.addf %131, %130 : vector<8x128xf32>
    %133 = arith.divf %131, %132 : vector<8x128xf32>
    %134 = math.tanh %128 : vector<8x128xf32>
    %135 = vector.extract_strided_slice %133 {offsets = [0, 0], sizes = [8, 32], strides = [1, 1]} : vector<8x128xf32> to vector<8x32xf32>
    %136 = vector.extract_strided_slice %133 {offsets = [0, 32], sizes = [8, 32], strides = [1, 1]} : vector<8x128xf32> to vector<8x32xf32>
    %137 = vector.extract_strided_slice %134 {offsets = [0, 64], sizes = [8, 32], strides = [1, 1]} : vector<8x128xf32> to vector<8x32xf32>
    %138 = vector.extract_strided_slice %133 {offsets = [0, 96], sizes = [8, 32], strides = [1, 1]} : vector<8x128xf32> to vector<8x32xf32>
    %139 = arith.mulf %136, %122 : vector<8x32xf32>
    %140 = arith.mulf %135, %137 : vector<8x32xf32>
    %141 = arith.addf %139, %140 : vector<8x32xf32>
    %142 = math.tanh %141 : vector<8x32xf32>
    %143 = arith.mulf %138, %142 : vector<8x32xf32>
    %144 = vector.extract_strided_slice %26 {offsets = [48, 0], sizes = [8, 128], strides = [1, 1]} : vector<64x128xf32> to vector<8x128xf32>
    %145 = arith.truncf %143 : vector<8x32xf32> to vector<8x32xbf16>
    %cst_34 = arith.constant dense<0.000000e+00> : vector<8x128xf32>
    %146 = tpu.matmul %145, %27, %cst_34 {dimension_numbers = #tpu.dot_dimension_numbers<[1], [0], [0], [1], [0, 0, 1, 1], [], []>} : vector<8x32xbf16>, vector<32x128xbf16>, vector<8x128xf32> -> vector<8x128xf32>
    %147 = arith.addf %144, %146 : vector<8x128xf32>
    %148 = arith.negf %147 : vector<8x128xf32>
    %149 = math.exp %148 : vector<8x128xf32>
    %cst_35 = arith.constant 1.000000e+00 : f32
    %150 = vector.broadcast %cst_35 : f32 to vector<8x128xf32>
    %151 = arith.addf %150, %149 : vector<8x128xf32>
    %152 = arith.divf %150, %151 : vector<8x128xf32>
    %153 = math.tanh %147 : vector<8x128xf32>
    %154 = vector.extract_strided_slice %152 {offsets = [0, 0], sizes = [8, 32], strides = [1, 1]} : vector<8x128xf32> to vector<8x32xf32>
    %155 = vector.extract_strided_slice %152 {offsets = [0, 32], sizes = [8, 32], strides = [1, 1]} : vector<8x128xf32> to vector<8x32xf32>
    %156 = vector.extract_strided_slice %153 {offsets = [0, 64], sizes = [8, 32], strides = [1, 1]} : vector<8x128xf32> to vector<8x32xf32>
    %157 = vector.extract_strided_slice %152 {offsets = [0, 96], sizes = [8, 32], strides = [1, 1]} : vector<8x128xf32> to vector<8x32xf32>
    %158 = arith.mulf %155, %141 : vector<8x32xf32>
    %159 = arith.mulf %154, %156 : vector<8x32xf32>
    %160 = arith.addf %158, %159 : vector<8x32xf32>
    %161 = math.tanh %160 : vector<8x32xf32>
    %162 = arith.mulf %157, %161 : vector<8x32xf32>
    %163 = vector.extract_strided_slice %26 {offsets = [56, 0], sizes = [8, 128], strides = [1, 1]} : vector<64x128xf32> to vector<8x128xf32>
    %164 = arith.truncf %162 : vector<8x32xf32> to vector<8x32xbf16>
    %cst_36 = arith.constant dense<0.000000e+00> : vector<8x128xf32>
    %165 = tpu.matmul %164, %27, %cst_36 {dimension_numbers = #tpu.dot_dimension_numbers<[1], [0], [0], [1], [0, 0, 1, 1], [], []>} : vector<8x32xbf16>, vector<32x128xbf16>, vector<8x128xf32> -> vector<8x128xf32>
    %166 = arith.addf %163, %165 : vector<8x128xf32>
    %167 = arith.negf %166 : vector<8x128xf32>
    %168 = math.exp %167 : vector<8x128xf32>
    %cst_37 = arith.constant 1.000000e+00 : f32
    %169 = vector.broadcast %cst_37 : f32 to vector<8x128xf32>
    %170 = arith.addf %169, %168 : vector<8x128xf32>
    %171 = arith.divf %169, %170 : vector<8x128xf32>
    %172 = math.tanh %166 : vector<8x128xf32>
    %173 = vector.extract_strided_slice %171 {offsets = [0, 0], sizes = [8, 32], strides = [1, 1]} : vector<8x128xf32> to vector<8x32xf32>
    %174 = vector.extract_strided_slice %171 {offsets = [0, 32], sizes = [8, 32], strides = [1, 1]} : vector<8x128xf32> to vector<8x32xf32>
    %175 = vector.extract_strided_slice %172 {offsets = [0, 64], sizes = [8, 32], strides = [1, 1]} : vector<8x128xf32> to vector<8x32xf32>
    %176 = vector.extract_strided_slice %171 {offsets = [0, 96], sizes = [8, 32], strides = [1, 1]} : vector<8x128xf32> to vector<8x32xf32>
    %177 = arith.mulf %174, %160 : vector<8x32xf32>
    %178 = arith.mulf %173, %175 : vector<8x32xf32>
    %179 = arith.addf %177, %178 : vector<8x32xf32>
    %180 = math.tanh %179 : vector<8x32xf32>
    %181 = arith.mulf %176, %180 : vector<8x32xf32>
    %182 = arith.truncf %181 : vector<8x32xf32> to vector<8x32xbf16>
    %c0_38 = arith.constant 0 : index
    %c0_39 = arith.constant 0 : index
    %183 = vector.load %arg9[%c0_38, %c0_39] : memref<32x32xbf16, #tpu.memory_space<vmem>>, vector<32x32xbf16>
    %cst_40 = arith.constant dense<0.000000e+00> : vector<8x32xf32>
    %184 = tpu.matmul %182, %183, %cst_40 {dimension_numbers = #tpu.dot_dimension_numbers<[1], [0], [0], [1], [0, 0, 1, 1], [], []>} : vector<8x32xbf16>, vector<32x32xbf16>, vector<8x32xf32> -> vector<8x32xf32>
    %c0_41 = arith.constant 0 : index
    %c0_42 = arith.constant 0 : index
    %185 = vector.load %arg10[%c0_41, %c0_42] : memref<1x32xf32, #tpu.memory_space<vmem>>, vector<1x32xf32>
    %186 = vector.broadcast %185 : vector<1x32xf32> to vector<8x32xf32>
    %187 = arith.addf %184, %186 : vector<8x32xf32>
    %cst_43 = arith.constant 0.000000e+00 : f32
    %188 = vector.broadcast %cst_43 : f32 to vector<8x32xf32>
    %189 = arith.maximumf %187, %188 : vector<8x32xf32>
    %c0_44 = arith.constant 0 : index
    %c0_45 = arith.constant 0 : index
    %190 = vector.load %arg11[%c0_44, %c0_45] : memref<1x32xf32, #tpu.memory_space<vmem>>, vector<1x32xf32>
    %191 = vector.broadcast %190 : vector<1x32xf32> to vector<8x32xf32>
    %192 = arith.mulf %189, %191 : vector<8x32xf32>
    %cst_46 = arith.constant dense<0.000000e+00> : vector<8xf32>
    %193 = vector.multi_reduction <add>, %192, %cst_46 [1] : vector<8x32xf32> to vector<8xf32>
    %194 = vector.shape_cast %193 : vector<8xf32> to vector<8x1xf32>
    %c0_47 = arith.constant 0 : index
    %c0_48 = arith.constant 0 : index
    %195 = vector.load %arg12[%c0_47, %c0_48] : memref<1x1xf32, #tpu.memory_space<vmem>>, vector<1x1xf32>
    %196 = vector.broadcast %195 : vector<1x1xf32> to vector<8x1xf32>
    %197 = arith.addf %194, %196 : vector<8x1xf32>
    %c0_49 = arith.constant 0 : index
    %c0_50 = arith.constant 0 : index
    %198 = vector.load %arg13[%c0_49, %c0_50] : memref<8x1xf32, #tpu.memory_space<vmem>>, vector<8x1xf32>
    tpu.vector_store %arg13[%c0_49, %c0_50], %197 {strides = array<i32>} : memref<8x1xf32, #tpu.memory_space<vmem>>, vector<8x1xf32>,
    return
  }
  func.func @transform_0(%arg0: i32) -> (i32, i32, i32) {
    %c0_i32 = arith.constant 0 : i32
    %c0_i32_0 = arith.constant 0 : i32
    %c0_i32_1 = arith.constant 0 : i32
    return %c0_i32, %arg0, %c0_i32_0 : i32, i32, i32
  }
  func.func @transform_1(%arg0: i32) -> (i32, i32) {
    %c0_i32 = arith.constant 0 : i32
    %c0_i32_0 = arith.constant 0 : i32
    %c0_i32_1 = arith.constant 0 : i32
    return %c0_i32, %c0_i32_0 : i32, i32
  }
  func.func @transform_2(%arg0: i32) -> (i32, i32) {
    %c0_i32 = arith.constant 0 : i32
    %c0_i32_0 = arith.constant 0 : i32
    %c0_i32_1 = arith.constant 0 : i32
    return %c0_i32, %c0_i32_0 : i32, i32
  }
  func.func @transform_3(%arg0: i32) -> (i32, i32) {
    %c0_i32 = arith.constant 0 : i32
    %c0_i32_0 = arith.constant 0 : i32
    %c0_i32_1 = arith.constant 0 : i32
    return %c0_i32, %c0_i32_0 : i32, i32
  }
  func.func @transform_4(%arg0: i32) -> (i32, i32) {
    %c0_i32 = arith.constant 0 : i32
    %c0_i32_0 = arith.constant 0 : i32
    %c0_i32_1 = arith.constant 0 : i32
    return %c0_i32, %c0_i32_0 : i32, i32
  }
  func.func @transform_5(%arg0: i32) -> (i32, i32) {
    %c0_i32 = arith.constant 0 : i32
    %c0_i32_0 = arith.constant 0 : i32
    %c0_i32_1 = arith.constant 0 : i32
    return %c0_i32, %c0_i32_0 : i32, i32
  }
  func.func @transform_6(%arg0: i32) -> (i32, i32) {
    %c0_i32 = arith.constant 0 : i32
    %c0_i32_0 = arith.constant 0 : i32
    %c0_i32_1 = arith.constant 0 : i32
    return %c0_i32, %c0_i32_0 : i32, i32
  }
  func.func @transform_7(%arg0: i32) -> (i32, i32) {
    %c0_i32 = arith.constant 0 : i32
    %c0_i32_0 = arith.constant 0 : i32
    %c0_i32_1 = arith.constant 0 : i32
    return %c0_i32, %c0_i32_0 : i32, i32
  }
  func.func @transform_8(%arg0: i32) -> (i32, i32) {
    %c0_i32 = arith.constant 0 : i32
    %c0_i32_0 = arith.constant 0 : i32
    %c0_i32_1 = arith.constant 0 : i32
    return %c0_i32, %c0_i32_0 : i32, i32
  }
  func.func @transform_9(%arg0: i32) -> (i32, i32) {
    %c0_i32 = arith.constant 0 : i32
    %c0_i32_0 = arith.constant 0 : i32
    %c0_i32_1 = arith.constant 0 : i32
    return %c0_i32, %c0_i32_0 : i32, i32
  }
  func.func @transform_10(%arg0: i32) -> (i32, i32) {
    %c0_i32 = arith.constant 0 : i32
    %c0_i32_0 = arith.constant 0 : i32
    %c0_i32_1 = arith.constant 0 : i32
    return %c0_i32, %c0_i32_0 : i32, i32
  }
  func.func @transform_11(%arg0: i32) -> (i32, i32) {
    %c0_i32 = arith.constant 0 : i32
    %c0_i32_0 = arith.constant 0 : i32
    %c0_i32_1 = arith.constant 0 : i32
    return %c0_i32, %c0_i32_0 : i32, i32
  }
  func.func @transform_12(%arg0: i32) -> (i32, i32) {
    %c0_i32 = arith.constant 0 : i32
    %c0_i32_0 = arith.constant 0 : i32
    return %arg0, %c0_i32 : i32, i32
  }
}

</mosaic_0001>

<bundles_post_ra>
// kernel: tpu_custom_call.1
= control target key start
LH: loop header
LB: loop body
LE: loop exit
PB: predicated region body
PF: predicated region fallthrough
CT: control target
= control target key end

     0   :  { %s1832_s0 = inlined_call_operand.vmem [shape: f32[8,8,16], index: 0, kind: input, shape index: {}]   ;;  %s1833_s1 = inlined_call_operand.hbm [shape: bf16[16,112], index: 1, kind: input, shape index: {}]   ;;  %s1834_s2 = inlined_call_operand.vmem [shape: f32[1,112], index: 2, kind: input, shape index: {}]   ;;  %s1835_s3 = inlined_call_operand.vmem [shape: bf16[112,96], index: 3, kind: input, shape index: {}]   ;;  %s1836_s4 = inlined_call_operand.vmem [shape: f32[1,48], index: 4, kind: input, shape index: {}]   ;;  %s1837_s5 = inlined_call_operand.vmem [shape: bf16[48,128], index: 5, kind: input, shape index: {}]   ;;  %s1838_s6 = inlined_call_operand.vmem [shape: bf16[32,128], index: 6, kind: input, shape index: {}]   ;;  %s1839_s7 = inlined_call_operand.vmem [shape: f32[1,128], index: 7, kind: input, shape index: {}]   ;;  %s1840_s8 = inlined_call_operand.vmem [shape: bf16[32,32], index: 8, kind: input, shape index: {}]   ;;  %s1841_s9 = inlined_call_operand.vmem [shape: f32[1,32], index: 9, kind: input, shape index: {}]   ;;  %s1842_s10 = inlined_call_operand.vmem [shape: f32[1,32], index: 10, kind: input, shape index: {}]   ;;  %s1843_s11 = inlined_call_operand.<no memory space> [shape: f32[1,1], index: 11, kind: input, shape index: {}]   ;;  %s1844_s12 = inlined_call_operand.vmem [shape: f32[8,1], index: 12, kind: output, shape index: {}]  }
   0x1   :  { %v17_v0 = vstv %s1843_s11 }
   0x2   :  { %18 = vst [vmem:[#allocation2] sm:$0x1] %v17_v0 }
   0x3   :  { %19 = vsyncpa [#allocation4], 0  ;;  %s1531_s23 = smov [#allocation3]   ;;  %s1507_s27 = scalar_lea.hbm %s1833_s1, 128 }
   0x4   :  { %s27_s24 = sshll.u32 %s1531_s23, 4  ;;  %p1508_p0 = scmp.ne.s32.totalorder %s1833_s1, %s1507_s27  ;;  %s28_s24 = int_to_ptr.vmem [resolvable:$true] %s27_s24 }
   0x5   :  { %p1511_p1 = scmp.lt.u32.totalorder %s1507_s27, %s1833_s1 }
   0x7   :  { %p1513_p2 = pnand %p1511_p1, %p1508_p0 }
   0x9   :  { %1516 = shalt.err (!%p1513_p2)
}
   0xa   :  { %s1517_s11 = scalar_lea.vmem %s28_s24, 128  ;;  %p1522_p4 = scmp.lt.s32.totalorder %s28_s24, %s28_s24 }
   0xb   :  { %p1518_p3 = scmp.ne.s32.totalorder %s28_s24, %s1517_s11  ;;  %p1523_p5 = scmp.lt.s32.totalorder %s1517_s11, %s1517_s11 }
   0xd   :  { %p1524_p6 = por %p1523_p5, %p1522_p4 }
   0xf   :  { %p1525_p7 = pnand %p1524_p6, %p1518_p3 }
  0x11   :  { %1528 = shalt.err (!%p1525_p7)
}
  0x12   :  { %s1532_s14 = smov 64   ;;  %s1533_s15 = smov 4  }
  0x13   :  { %33 = dma.hbm_to_vmem [thread:$0]  %s1833_s1, 128, %s28_s24, [#allocation4], %s1532_s14, %s1532_s14, %s1533_s15  }
  0x14   :  { %1529 = dma.done.wait [#allocation4], 128  }
  0x15   :  { %1530 = vsyncadd [#allocation4], 4294967168  ;;  %v1428_v1 = vld [vmem:[#allocation3] sm:$0xff]   ;;  %vm109_vm0 = vcmask 130048   ;;  %v60_v4 = vld [vmem:[%s1832_s0 + $0x10] sm:$0xff]  ;;  %vm255_vm1 = vcmask 916480  }
  0x16   :  { %v58_v2 = vld [vmem:[%s1832_s0] sm:$0xff]  ;;  %v59_v3 = vld [vmem:[%s1832_s0 + $0x8] sm:$0xff]  ;;  %1302 = vmatprep.subr.bf16.mxu0 %v1428_v1  ;;  %v61_v6 = vld [vmem:[%s1832_s0 + $0x18] sm:$0xff]  ;;  %s1534_s15 = smov 80   ;;  %v1535_v57 = vmov 0.0   ;;  %vm1536_vm2 = vmmov 0  }
  0x17   :  { %v1248_v5 = vpack.c.bf16 %v59_v3, %v58_v2  ;;  %v62_v7 = vld [vmem:[%s1832_s0 + $0x20] sm:$0xff]  ;;  %v63_v8 = vld [vmem:[%s1832_s0 + $0x28] sm:$0xff]  ;;  %1303 = vmatpush3.bf16.msra.mxu0 %v1428_v1  ;;  %v1249_v9 = vpack.c.bf16 %v61_v6, %v60_v4  ;;  %v64_v13 = vld [vmem:[%s1832_s0 + $0x30] sm:$0xff]  ;;  %vm431_vm3 = vcmask 392192   ;;  %vm525_vm4 = vcmask 261120  }
  0x18   :  { %v1250_v10 = vpack.c.bf16 %v63_v8, %v62_v7  ;;  %v1429_v11 = vld [vmem:[%s1835_s3] sm:$0xff]   ;;  %v1430_v12 = vld [vmem:[%s1835_s3 + $0x8] sm:$0xff]   ;;  %v65_v14 = vld [vmem:[%s1832_s0 + $0x38] sm:$0xff]  ;;  %vm1188_vm5 = vcmask 7168  }
  0x19   :  { %1304 = vmatprep.mubr.msk.bf16.mxu0 %vm109_vm0, %v1248_v5  ;;  %1312 = vmatprep.subr.bf16.mxu1 %v1429_v11  ;;  %v1431_v15 = vld [vmem:[%s1835_s3 + $0x10] sm:$0xff]   ;;  %v1251_v16 = vpack.c.bf16 %v65_v14, %v64_v13  ;;  %v1432_v17 = vld [vmem:[%s1835_s3 + $0x18] sm:$0xff]   ;;  %v1433_v18 = vld [vmem:[%s1835_s3 + $0x20] sm:$0xff]  }
  0x1a   :  { %1305 = vmatmul.mubr.msk.bf16.vlgmr.msra.gmra.mrb[0].mxu0 %vm109_vm0, %v1249_v9  ;;  %1313 = vmatpush3.bf16.msra.mxu1 %v1429_v11  ;;  %v1434_v19 = vld [vmem:[%s1835_s3 + $0x28] sm:$0xff]   ;;  %v1435_v20 = vld [vmem:[%s1835_s3 + $0x30] sm:$0xff]   ;;  %v1195_v21 = vld [vmem:[%s1834_s2] ss:$0 sm:$0xff] }
  0x1b   :  { %1308 = vmatprep.mubr.msk.bf16.mxu0 %vm109_vm0, %v1250_v10  ;;  %1314 = vmatprep.subr.bf16.mxu1 %v1430_v12  ;;  %v1436_v50 = vld [vmem:[%s1837_s5] sm:$0xff]   ;;  %v1437_v51 = vld [vmem:[%s1837_s5 + $0x8] sm:$0xff]   ;;  %v1438_v52 = vld [vmem:[%s1837_s5 + $0x10] sm:$0xff]  }
  0x1c   :  { %1334 = vmatprep.subr.bf16.mxu0 %v1436_v50  ;;  %v1691_v60 = vld [vmem:[%s1838_s6] sm:$0xff]   ;;  %v1698_v63 = vld [vmem:[%s1838_s6 + $0x8] sm:$0xff]  }
  0x1d   :  { %1335 = vmatpush3.bf16.msra.mxu0 %v1436_v50  ;;  %v1216_v3 = vld [vmem:[%s1836_s4] ss:$0 sm:$0xff] }
  0x1e   :  { %1315 = vmatpush3.bf16.msra.mxu1 %v1430_v12  ;;  %1336 = vmatprep.subr.bf16.mxu0 %v1437_v51 }
  0x1f   :  { %1316 = vmatprep.subr.bf16.mxu1 %v1431_v15 }
  0x21   :  { %1337 = vmatpush3.bf16.msra.mxu0 %v1437_v51 }
  0x22   :  { %1309 = vmatmul.mubr.msk.bf16.gmra.mrb[4].mxu0 %vm109_vm0, %v1251_v16  ;;  %1317 = vmatpush3.bf16.msra.mxu1 %v1431_v15 }
  0x23   :  { %1318 = vmatprep.subr.bf16.mxu1 %v1432_v17  ;;  %1338 = vmatprep.subr.bf16.mxu0 %v1438_v52 }
  0x25   :  { %1339 = vmatpush3.bf16.msra.mxu0 %v1438_v52 }
  0x26   :  { %1319 = vmatpush3.bf16.msra.mxu1 %v1432_v17  ;;  %1348 = vmatprep.subr.bf16.mxu0 %v1535_v57 }
  0x27   :  { %1320 = vmatprep.subr.bf16.mxu1 %v1433_v18 }
  0x2a   :  { %1321 = vmatpush3.bf16.msra.mxu1 %v1433_v18 }
  0x2b   :  { %1322 = vmatprep.subr.bf16.mxu1 %v1434_v19 }
  0x2e   :  { %1323 = vmatpush3.bf16.msra.mxu1 %v1434_v19 }
  0x2f   :  { %1324 = vmatprep.subr.bf16.mxu1 %v1435_v20 }
  0x32   :  { %1325 = vmatpush3.bf16.msra.mxu1 %v1435_v20 }
  0x33   :  { %1364 = vmatprep.subr.bf16.mxu1 %v1535_v57 }
  0xed   :  { %v1306_v22 = vpop.f32.mrb[0].mxu0 }
  0xee   :  { %v165_v23 = vadd.f32 %v1306_v22, %v1195_v21  ;;  %v156_v24 = vpop.f32.mrb[1].mxu0 }
  0xef   :  { %v157_v25 = vadd.f32 %v1195_v21, %v156_v24  ;;  %v1307_v26 = vpop.f32.mrb[2].mxu0 }
  0xf0   :  { %v168_v27 = vadd.f32 %v1307_v26, %v1195_v21  ;;  %v159_v28 = vpop.f32.mrb[3].mxu0  ;;  %v189_v30 = vmax.f32 %v165_v23, 0.0 }
  0xf1   :  { %v160_v29 = vadd.f32 %v1195_v21, %v159_v28  ;;  %v187_v32 = vmax.f32 %v157_v25, 0.0 }
  0xf2   :  { %v190_v31 = vmax.f32 %v168_v27, 0.0 }
  0xf3   :  { %v188_v33 = vmax.f32 %v160_v29, 0.0 }
  0xf4   :  { %v196_v34 = vpack.c.bf16 %v190_v31, %v189_v30 }
  0xf5   :  { %v1310_v35 = vpop.f32.mrb[4].mxu0  ;;  %v195_v36 = vpack.c.bf16 %v188_v33, %v187_v32 }
  0xf6   :  { %v181_v37 = vadd.f32 %v1310_v35, %v1195_v21  ;;  %v172_v38 = vpop.f32.mrb[5].mxu0 }
  0xf7   :  { %v173_v39 = vadd.f32 %v1195_v21, %v172_v38  ;;  %v1311_v40 = vpop.f32.mrb[6].mxu0  ;;  %1326 = vmatprep.mubr.msk.bf16.mxu1 %vm255_vm1, %v195_v36  ;;  %v1217_v38 = vld [vmem:[%s1839_s7] ss:$0 sm:$0xff]  ;;  %s1538_s7 = smov 32  }
  0xf8   :  { %v184_v41 = vadd.f32 %v1311_v40, %v1195_v21  ;;  %v175_v42 = vpop.f32.mrb[7].mxu0  ;;  %1327 = vmatmul.mubr.msk.bf16.vlgmr.msra.gmra.mrb[0].mxu1 %vm255_vm1, %v196_v34  ;;  %v193_v44 = vmax.f32 %v181_v37, 0.0  ;;  %v1537_v37 = vmov 0  }
  0xf9   :  { %v176_v43 = vadd.f32 %v1195_v21, %v175_v42  ;;  %v191_v46 = vmax.f32 %v173_v39, 0.0  ;;  %1365 = vmatpush3.bf16.msra.mxu1 %v1691_v60 }
  0xfa   :  { %v194_v45 = vmax.f32 %v184_v41, 0.0  ;;  %1366 = vmatprep.subr.bf16.mxu1 %v1535_v57 }
  0xfb   :  { %v192_v47 = vmax.f32 %v176_v43, 0.0 }
  0xfc   :  { %v198_v48 = vpack.c.bf16 %v194_v45, %v193_v44 }
  0xfd   :  { %v197_v49 = vpack.c.bf16 %v192_v47, %v191_v46  ;;  %1367 = vmatpush3.bf16.msra.mxu1 %v1698_v63 }
  0xfe   :  { %1380 = vmatprep.subr.bf16.mxu1 %v1535_v57 }
  0xff   :  { %1330 = vmatprep.mubr.msk.bf16.mxu1 %vm255_vm1, %v197_v49 }
 0x100   :  { %1331 = vmatmul.mubr.msk.bf16.gmra.mrb[4].mxu1 %vm255_vm1, %v198_v48 }
 0x101   :  { %1368 = vmatprep.mubr.msk.bf16.mxu1 %vm1536_vm2, %v1535_v57 }
 0x1cb   :  { %v1328_v53 = vpop.f32.mrb[0].mxu1 }
 0x1cc   :  { %345 = vrot.lane.b32.xlu1 %v1328_v53, %s1534_s15  ;;  %v302_v54 = vpop.f32.mrb[1].mxu1 }
 0x1cd   :  { %341 = vrot.lane.b32.xlu0 %v302_v54, %s1534_s15  ;;  %v1329_v55 = vpop.f32.mrb[2].mxu1 }
 0x1ce   :  { %v305_v56 = vpop.f32.mrb[3].mxu1 }
 0x1d0   :  { %347 = vrot.lane.b32.xlu1 %v1329_v55, %s1534_s15 }
 0x1d1   :  { %343 = vrot.lane.b32.xlu0 %v305_v56, %s1534_s15 }
 0x1d3   :  { %v1332_v58 = vpop.f32.mrb[4].mxu1 }
 0x1d4   :  { %v318_v59 = vpop.f32.mrb[5].mxu1 }
 0x1d5   :  { %349 = vrot.lane.b32.xlu0 %v318_v59, %s1534_s15  ;;  %v1333_v61 = vpop.f32.mrb[6].mxu1 }
 0x1d6   :  { %v321_v62 = vpop.f32.mrb[7].mxu1 }
 0x1d7   :  { %351 = vrot.lane.b32.xlu1 %v321_v62, %s1534_s15 }
 0x1d9   :  { %353 = vrot.lane.b32.xlu0 %v1332_v58, %s1534_s15 }
 0x1db   :  { %355 = vrot.lane.b32.xlu1 %v1333_v61, %s1534_s15 }
 0x23e   :  { %v346_v0 = vpop.permute.xlu1 %345 }
 0x23f   :  { %v367_v1 = vmax.f32 %v1328_v53, %v346_v0  ;;  %v342_v2 = vpop.permute.xlu0 %341 }
 0x240   :  { %v365_v4 = vmax.f32 %v302_v54, %v342_v2 }
 0x241   :  { %v382_v6 = vadd.f32 %v1216_v3, %v367_v1 }
 0x242   :  { %v348_v5 = vpop.permute.xlu1 %347  ;;  %v380_v9 = vadd.f32 %v1216_v3, %v365_v4 }
 0x243   :  { %v368_v7 = vmax.f32 %v1329_v55, %v348_v5  ;;  %v344_v8 = vpop.permute.xlu0 %343  ;;  %v390_v13 = vmax.f32 %v382_v6, 0.0 }
 0x244   :  { %v366_v10 = vmax.f32 %v305_v56, %v344_v8  ;;  %v388_v16 = vmax.f32 %v380_v9, 0.0 }
 0x245   :  { %v383_v11 = vadd.f32 %v1216_v3, %v368_v7 }
 0x246   :  { %v381_v12 = vadd.f32 %v1216_v3, %v366_v10 }
 0x247   :  { %v391_v14 = vmax.f32 %v383_v11, 0.0  ;;  %v350_v15 = vpop.permute.xlu0 %349 }
 0x248   :  { %v389_v17 = vmax.f32 %v381_v12, 0.0  ;;  %v369_v18 = vmax.f32 %v318_v59, %v350_v15 }
 0x249   :  { %v397_v19 = vpack.c.bf16 %v391_v14, %v390_v13  ;;  %v352_v20 = vpop.permute.xlu1 %351 }
 0x24a   :  { %v396_v21 = vpack.c.bf16 %v389_v17, %v388_v16  ;;  %v384_v22 = vadd.f32 %v1216_v3, %v369_v18  ;;  %v370_v23 = vmax.f32 %v321_v62, %v352_v20 }
 0x24b   :  { %v354_v24 = vpop.permute.xlu0 %353 }
 0x24c   :  { %v385_v25 = vadd.f32 %v1216_v3, %v370_v23  ;;  %v371_v26 = vmax.f32 %v1332_v58, %v354_v24  ;;  %1340 = vmatprep.mubr.msk.bf16.mxu0 %vm431_vm3, %v396_v21  ;;  %v392_v28 = vmax.f32 %v384_v22, 0.0 }
 0x24d   :  { %1341 = vmatmul.mubr.msk.bf16.vlgmr.msra.gmra.mrb[8].mxu0 %vm431_vm3, %v397_v19  ;;  %v356_v27 = vpop.permute.xlu1 %355 }
 0x24e   :  { %v393_v29 = vmax.f32 %v385_v25, 0.0  ;;  %v386_v30 = vadd.f32 %v1216_v3, %v371_v26  ;;  %v372_v31 = vmax.f32 %v1333_v61, %v356_v27  ;;  %1349 = vmatpush3.bf16.msra.mxu0 %v1691_v60 }
 0x24f   :  { %1350 = vmatprep.subr.bf16.mxu0 %v1535_v57 }
 0x250   :  { %v398_v32 = vpack.c.bf16 %v393_v29, %v392_v28  ;;  %v387_v33 = vadd.f32 %v1216_v3, %v372_v31  ;;  %v394_v34 = vmax.f32 %v386_v30, 0.0 }
 0x252   :  { %v395_v35 = vmax.f32 %v387_v33, 0.0  ;;  %1344 = vmatprep.mubr.msk.bf16.mxu0 %vm431_vm3, %v398_v32  ;;  %1351 = vmatpush3.bf16.msra.mxu0 %v1698_v63 }
 0x253   :  { %1356 = vmatprep.subr.bf16.mxu0 %v1535_v57 }
 0x254   :  { %v399_v36 = vpack.c.bf16 %v395_v35, %v394_v34 }
 0x256   :  { %1345 = vmatmul.mubr.msk.bf16.gmra.mrb[12].mxu0 %vm431_vm3, %v399_v36 }
 0x257   :  { %1352 = vmatprep.mubr.msk.bf16.mxu0 %vm1536_vm2, %v1535_v57 }
 0x25e   :  { %1353 = vmatmul.mubr.bf16.vlgmr.msra.gmra.mrb[16].mxu0 %v1537_v37 }
 0x25f   :  { %1357 = vmatpush3.bf16.msra.mxu0 %v1691_v60  ;;  %1360 = vmatprep.mubr.msk.bf16.mxu0 %vm1536_vm2, %v1535_v57 }
 0x260   :  { %1358 = vmatprep.subr.bf16.mxu0 %v1535_v57 }
 0x263   :  { %1359 = vmatpush3.bf16.msra.mxu0 %v1698_v63 }
 0x264   :  { %1372 = vmatprep.subr.bf16.mxu0 %v1535_v57 }
 0x320   :  { %v1342_v39 = vpop.f32.mrb[8].mxu0 }
 0x321   :  { %v1726_v40 = vadd.f32 %v1342_v39, %v1217_v38  ;;  %v478_v41 = vpop.f32.mrb[9].mxu0 }
 0x322   :  { %v1343_v42 = vpop.f32.mrb[10].mxu0  ;;  %v479_v54 = vadd.f32 %v1217_v38, %v478_v41 }
 0x323   :  { %v1728_v43 = vadd.f32 %v1343_v42, %v1217_v38  ;;  %v481_v44 = vpop.f32.mrb[11].mxu0 }
 0x324   :  { %v482_v45 = vadd.f32 %v1217_v38, %v481_v44 }
 0x329   :  { %v1346_v46 = vpop.f32.mrb[12].mxu0 }
 0x32a   :  { %v1730_v47 = vadd.f32 %v1346_v46, %v1217_v38  ;;  %v494_v48 = vpop.f32.mrb[13].mxu0 }
 0x32b   :  { %v1732_v49 = vadd.f32 %v1217_v38, %v494_v48  ;;  %v1347_v50 = vpop.f32.mrb[14].mxu0 }
 0x32c   :  { %v1734_v51 = vadd.f32 %v1347_v50, %v1217_v38  ;;  %v497_v52 = vpop.f32.mrb[15].mxu0 }
 0x32d   :  { %v1736_v53 = vadd.f32 %v1217_v38, %v497_v52 }
 0x331   :  { %v563_v55 = vpop.f32.mrb[16].mxu0 }
 0x332   :  { %v569_v56 = vadd.f32 %v563_v55, %v479_v54  ;;  %v1354_v58 = vpop.f32.mrb[17].mxu0 }
 0x333   :  { %v566_v59 = vpop.f32.mrb[18].mxu0 }
 0x334   :  { %1443 = vtanh.f32 %v569_v56  ;;  %v1355_v61 = vpop.f32.mrb[19].mxu0  ;;  %v1227_v0 = vmul.f32 -1.442695, %v569_v56 }
 0x336   :  { %1445 = vpow2.f32 %v1227_v0 }
 0x33e   :  { %v1444_v62 = vpop.eup %1443 }
 0x33f   :  { %579 = vrot.lane.b32.xlu0 %v1444_v62, %s1532_s14 }
 0x340   :  { %v1446_v1 = vpop.eup %1445 }
 0x341   :  { %v573_v2 = vadd.f32 1.0, %v1446_v1 }
 0x343   :  { %1447 = vrcp.f32 %v573_v2 }
 0x34d   :  { %v1448_v3 = vpop.eup %1447 }
 0x34e   :  { %v577_v6 = vmul.f32 0.0, %v1448_v3 }
 0x3b1   :  { %v580_v4 = vpop.permute.xlu0 %579 }
 0x3b2   :  { %v582_v5 = vmul.f32 %v1448_v3, %v580_v4 }
 0x3b4   :  { %584 = vrot.lane.b32.xlu1 %v582_v5, %s1538_s7 }
 0x426   :  { %v585_v7 = vpop.permute.xlu1 %584 }
 0x427   :  { %v587_v8 = vadd.f32 %v585_v7, %v577_v6 }
 0x429   :  { %1449 = vtanh.f32 %v587_v8 }
 0x433   :  { %v1450_v9 = vpop.eup %1449 }
 0x434   :  { %590 = vrot.lane.b32.xlu0 %v1450_v9, %s1532_s14 }
 0x4a6   :  { %v591_v10 = vpop.permute.xlu0 %590 }
 0x4a7   :  { %v593_v11 = vmul.f32 %v1448_v3, %v591_v10 }
 0x4a9   :  { %v594_v12 = vpack.c.bf16 %v593_v11, %v593_v11 }
 0x4ab   :  { %596 = vrot.lane.b32.xlu1 %v594_v12, %s1538_s7 }
 0x51d   :  { %v597_v13 = vpop.permute.xlu1 %596 }
 0x51e   :  { %1361 = vmatmul.mubr.msk.bf16.vlgmr.msra.gmra.mrb[20].mxu0 %vm525_vm4, %v597_v13 }
 0x51f   :  { %1373 = vmatpush3.bf16.msra.mxu0 %v1691_v60  ;;  %1376 = vmatprep.mubr.msk.bf16.mxu0 %vm1536_vm2, %v1535_v57 }
 0x520   :  { %1374 = vmatprep.subr.bf16.mxu0 %v1535_v57 }
 0x523   :  { %1375 = vmatpush3.bf16.msra.mxu0 %v1698_v63 }
 0x524   :  { %1388 = vmatprep.subr.bf16.mxu0 %v1535_v57 }
 0x5f1   :  { %v635_v14 = vpop.f32.mrb[20].mxu0 }
 0x5f2   :  { %v641_v15 = vadd.f32 %v635_v14, %v482_v45  ;;  %v1362_v16 = vpop.f32.mrb[21].mxu0 }
 0x5f3   :  { %v638_v17 = vpop.f32.mrb[22].mxu0 }
 0x5f4   :  { %1451 = vtanh.f32 %v641_v15  ;;  %v1363_v18 = vpop.f32.mrb[23].mxu0  ;;  %v1229_v20 = vmul.f32 -1.442695, %v641_v15 }
 0x5f6   :  { %1453 = vpow2.f32 %v1229_v20 }
 0x5fe   :  { %v1452_v19 = vpop.eup %1451 }
 0x5ff   :  { %651 = vrot.lane.b32.xlu0 %v1452_v19, %s1532_s14 }
 0x600   :  { %v1454_v21 = vpop.eup %1453 }
 0x601   :  { %v645_v22 = vadd.f32 1.0, %v1454_v21 }
 0x603   :  { %1455 = vrcp.f32 %v645_v22 }
 0x60d   :  { %v1456_v23 = vpop.eup %1455 }
 0x60e   :  { %v649_v26 = vmul.f32 %v1456_v23, %v587_v8 }
 0x671   :  { %v652_v24 = vpop.permute.xlu0 %651 }
 0x672   :  { %v654_v25 = vmul.f32 %v1456_v23, %v652_v24 }
 0x674   :  { %656 = vrot.lane.b32.xlu1 %v654_v25, %s1538_s7 }
 0x6e6   :  { %v657_v27 = vpop.permute.xlu1 %656 }
 0x6e7   :  { %v659_v28 = vadd.f32 %v657_v27, %v649_v26 }
 0x6e9   :  { %1457 = vtanh.f32 %v659_v28 }
 0x6f3   :  { %v1458_v29 = vpop.eup %1457 }
 0x6f4   :  { %662 = vrot.lane.b32.xlu0 %v1458_v29, %s1532_s14 }
 0x766   :  { %v663_v30 = vpop.permute.xlu0 %662 }
 0x767   :  { %v665_v31 = vmul.f32 %v1456_v23, %v663_v30 }
 0x769   :  { %v666_v32 = vpack.c.bf16 %v665_v31, %v665_v31 }
 0x76b   :  { %668 = vrot.lane.b32.xlu1 %v666_v32, %s1538_s7 }
 0x7dd   :  { %v669_v33 = vpop.permute.xlu1 %668 }
 0x7de   :  { %1369 = vmatmul.mubr.msk.bf16.vlgmr.msra.gmra.mrb[8].mxu1 %vm525_vm4, %v669_v33 }
 0x7df   :  { %1381 = vmatpush3.bf16.msra.mxu1 %v1691_v60  ;;  %1384 = vmatprep.mubr.msk.bf16.mxu1 %vm1536_vm2, %v1535_v57 }
 0x7e0   :  { %1382 = vmatprep.subr.bf16.mxu1 %v1535_v57 }
 0x7e3   :  { %1383 = vmatpush3.bf16.msra.mxu1 %v1698_v63 }
 0x7e4   :  { %1396 = vmatprep.subr.bf16.mxu1 %v1535_v57 }
 0x8b1   :  { %v707_v34 = vpop.f32.mrb[8].mxu1 }
 0x8b2   :  { %v713_v35 = vadd.f32 %v707_v34, %v1726_v40  ;;  %v1370_v36 = vpop.f32.mrb[9].mxu1 }
 0x8b3   :  { %v710_v37 = vpop.f32.mrb[10].mxu1 }
 0x8b4   :  { %1459 = vtanh.f32 %v713_v35  ;;  %v1371_v38 = vpop.f32.mrb[11].mxu1  ;;  %v1231_v41 = vmul.f32 -1.442695, %v713_v35 }
 0x8b6   :  { %1461 = vpow2.f32 %v1231_v41 }
 0x8be   :  { %v1460_v39 = vpop.eup %1459 }
 0x8bf   :  { %723 = vrot.lane.b32.xlu0 %v1460_v39, %s1532_s14 }
 0x8c0   :  { %v1462_v42 = vpop.eup %1461 }
 0x8c1   :  { %v717_v44 = vadd.f32 1.0, %v1462_v42 }
 0x8c3   :  { %1463 = vrcp.f32 %v717_v44 }
 0x8cd   :  { %v1464_v45 = vpop.eup %1463 }
 0x8ce   :  { %v721_v50 = vmul.f32 %v1464_v45, %v659_v28 }
 0x931   :  { %v724_v46 = vpop.permute.xlu0 %723 }
 0x932   :  { %v726_v48 = vmul.f32 %v1464_v45, %v724_v46 }
 0x934   :  { %728 = vrot.lane.b32.xlu1 %v726_v48, %s1538_s7 }
 0x9a6   :  { %v729_v52 = vpop.permute.xlu1 %728 }
 0x9a7   :  { %v731_v40 = vadd.f32 %v729_v52, %v721_v50 }
 0x9a9   :  { %1465 = vtanh.f32 %v731_v40 }
 0x9b3   :  { %v1466_v54 = vpop.eup %1465 }
 0x9b4   :  { %734 = vrot.lane.b32.xlu0 %v1466_v54, %s1532_s14 }
 0xa26   :  { %v735_v55 = vpop.permute.xlu0 %734 }
 0xa27   :  { %v737_v56 = vmul.f32 %v1464_v45, %v735_v55 }
 0xa29   :  { %v738_v58 = vpack.c.bf16 %v737_v56, %v737_v56 }
 0xa2b   :  { %740 = vrot.lane.b32.xlu1 %v738_v58, %s1538_s7 }
 0xa9d   :  { %v741_v59 = vpop.permute.xlu1 %740 }
 0xa9e   :  { %1377 = vmatmul.mubr.msk.bf16.vlgmr.msra.gmra.mrb[24].mxu0 %vm525_vm4, %v741_v59 }
 0xa9f   :  { %1389 = vmatpush3.bf16.msra.mxu0 %v1691_v60  ;;  %1392 = vmatprep.mubr.msk.bf16.mxu0 %vm1536_vm2, %v1535_v57 }
 0xaa0   :  { %1390 = vmatprep.subr.bf16.mxu0 %v1535_v57 }
 0xaa3   :  { %1391 = vmatpush3.bf16.msra.mxu0 %v1698_v63 }
 0xaa4   :  { %1404 = vmatprep.subr.bf16.mxu0 %v1535_v57 }
 0xb71   :  { %v779_v61 = vpop.f32.mrb[24].mxu0 }
 0xb72   :  { %v785_v62 = vadd.f32 %v779_v61, %v1728_v43  ;;  %v1378_v0 = vpop.f32.mrb[25].mxu0 }
 0xb73   :  { %v782_v1 = vpop.f32.mrb[26].mxu0 }
 0xb74   :  { %1467 = vtanh.f32 %v785_v62  ;;  %v1379_v2 = vpop.f32.mrb[27].mxu0  ;;  %v1233_v4 = vmul.f32 -1.442695, %v785_v62 }
 0xb76   :  { %1469 = vpow2.f32 %v1233_v4 }
 0xb7e   :  { %v1468_v3 = vpop.eup %1467 }
 0xb7f   :  { %795 = vrot.lane.b32.xlu0 %v1468_v3, %s1532_s14 }
 0xb80   :  { %v1470_v5 = vpop.eup %1469 }
 0xb81   :  { %v789_v6 = vadd.f32 1.0, %v1470_v5 }
 0xb83   :  { %1471 = vrcp.f32 %v789_v6 }
 0xb8d   :  { %v1472_v7 = vpop.eup %1471 }
 0xb8e   :  { %v793_v10 = vmul.f32 %v1472_v7, %v731_v40 }
 0xbf1   :  { %v796_v8 = vpop.permute.xlu0 %795 }
 0xbf2   :  { %v798_v9 = vmul.f32 %v1472_v7, %v796_v8 }
 0xbf4   :  { %800 = vrot.lane.b32.xlu1 %v798_v9, %s1538_s7 }
 0xc66   :  { %v801_v11 = vpop.permute.xlu1 %800 }
 0xc67   :  { %v803_v43 = vadd.f32 %v801_v11, %v793_v10 }
 0xc69   :  { %1473 = vtanh.f32 %v803_v43 }
 0xc73   :  { %v1474_v12 = vpop.eup %1473 }
 0xc74   :  { %806 = vrot.lane.b32.xlu0 %v1474_v12, %s1532_s14 }
 0xce6   :  { %v807_v13 = vpop.permute.xlu0 %806 }
 0xce7   :  { %v809_v14 = vmul.f32 %v1472_v7, %v807_v13 }
 0xce9   :  { %v810_v15 = vpack.c.bf16 %v809_v14, %v809_v14 }
 0xceb   :  { %812 = vrot.lane.b32.xlu1 %v810_v15, %s1538_s7 }
 0xd5d   :  { %v813_v16 = vpop.permute.xlu1 %812 }
 0xd5e   :  { %1385 = vmatmul.mubr.msk.bf16.vlgmr.msra.gmra.mrb[12].mxu1 %vm525_vm4, %v813_v16 }
 0xd5f   :  { %1397 = vmatpush3.bf16.msra.mxu1 %v1691_v60  ;;  %1400 = vmatprep.mubr.msk.bf16.mxu1 %vm1536_vm2, %v1535_v57 }
 0xd60   :  { %1398 = vmatprep.subr.bf16.mxu1 %v1535_v57 }
 0xd63   :  { %1399 = vmatpush3.bf16.msra.mxu1 %v1698_v63 }
 0xd64   :  { %1412 = vmatprep.subr.bf16.mxu1 %v1535_v57 }
 0xe31   :  { %v851_v17 = vpop.f32.mrb[12].mxu1 }
 0xe32   :  { %v857_v18 = vadd.f32 %v851_v17, %v1732_v49  ;;  %v1386_v19 = vpop.f32.mrb[13].mxu1 }
 0xe33   :  { %v854_v20 = vpop.f32.mrb[14].mxu1 }
 0xe34   :  { %1475 = vtanh.f32 %v857_v18  ;;  %v1387_v21 = vpop.f32.mrb[15].mxu1  ;;  %v1235_v23 = vmul.f32 -1.442695, %v857_v18 }
 0xe36   :  { %1477 = vpow2.f32 %v1235_v23 }
 0xe3e   :  { %v1476_v22 = vpop.eup %1475 }
 0xe3f   :  { %867 = vrot.lane.b32.xlu0 %v1476_v22, %s1532_s14 }
 0xe40   :  { %v1478_v24 = vpop.eup %1477 }
 0xe41   :  { %v861_v25 = vadd.f32 1.0, %v1478_v24 }
 0xe43   :  { %1479 = vrcp.f32 %v861_v25 }
 0xe4d   :  { %v1480_v26 = vpop.eup %1479 }
 0xe4e   :  { %v865_v29 = vmul.f32 %v1480_v26, %v803_v43 }
 0xeb1   :  { %v868_v27 = vpop.permute.xlu0 %867 }
 0xeb2   :  { %v870_v28 = vmul.f32 %v1480_v26, %v868_v27 }
 0xeb4   :  { %872 = vrot.lane.b32.xlu1 %v870_v28, %s1538_s7 }
 0xf26   :  { %v873_v30 = vpop.permute.xlu1 %872 }
 0xf27   :  { %v875_v49 = vadd.f32 %v873_v30, %v865_v29  ;;  %v1441_v29 = vld [vmem:[%s1840_s8] sm:$0xff]   ;;  %v1442_v30 = vld [vmem:[%s1840_s8 + $0x8] sm:$0xff]  }
 0xf29   :  { %1481 = vtanh.f32 %v875_v49 }
 0xf33   :  { %v1482_v31 = vpop.eup %1481 }
 0xf34   :  { %878 = vrot.lane.b32.xlu0 %v1482_v31, %s1532_s14 }
 0xfa6   :  { %v879_v32 = vpop.permute.xlu0 %878 }
 0xfa7   :  { %v881_v33 = vmul.f32 %v1480_v26, %v879_v32 }
 0xfa9   :  { %v882_v34 = vpack.c.bf16 %v881_v33, %v881_v33 }
 0xfab   :  { %884 = vrot.lane.b32.xlu1 %v882_v34, %s1538_s7 }
0x101d   :  { %v885_v35 = vpop.permute.xlu1 %884 }
0x101e   :  { %1393 = vmatmul.mubr.msk.bf16.vlgmr.msra.gmra.mrb[28].mxu0 %vm525_vm4, %v885_v35  ;;  %v1242_v35 = vld [vmem:[%s1841_s9] ss:$0 sm:$0xff] }
0x101f   :  { %1405 = vmatpush3.bf16.msra.mxu0 %v1691_v60  ;;  %1408 = vmatprep.mubr.msk.bf16.mxu0 %vm1536_vm2, %v1535_v57 }
0x1020   :  { %1406 = vmatprep.subr.bf16.mxu0 %v1535_v57 }
0x1023   :  { %1407 = vmatpush3.bf16.msra.mxu0 %v1698_v63 }
0x10f1   :  { %v923_v36 = vpop.f32.mrb[28].mxu0 }
0x10f2   :  { %v929_v37 = vadd.f32 %v923_v36, %v1736_v53  ;;  %v1394_v38 = vpop.f32.mrb[29].mxu0 }
0x10f3   :  { %v926_v39 = vpop.f32.mrb[30].mxu0 }
0x10f4   :  { %1483 = vtanh.f32 %v929_v37  ;;  %v1395_v41 = vpop.f32.mrb[31].mxu0  ;;  %v1237_v44 = vmul.f32 -1.442695, %v929_v37  ;;  %v1246_v39 = vld [vmem:[%s1842_s10] ss:$0 sm:$0xff] }
0x10f6   :  { %1485 = vpow2.f32 %v1237_v44 }
0x10fe   :  { %v1484_v42 = vpop.eup %1483 }
0x10ff   :  { %939 = vrot.lane.b32.xlu0 %v1484_v42, %s1532_s14 }
0x1100   :  { %v1486_v60 = vpop.eup %1485 }
0x1101   :  { %v933_v45 = vadd.f32 1.0, %v1486_v60 }
0x1103   :  { %1487 = vrcp.f32 %v933_v45  ;;  %v1247_v45 = vld [vmem:[#allocation2] ss:$0 sm:$0xff] }
0x110d   :  { %v1488_v46 = vpop.eup %1487 }
0x110e   :  { %v937_v63 = vmul.f32 %v1488_v46, %v875_v49 }
0x1171   :  { %v940_v48 = vpop.permute.xlu0 %939 }
0x1172   :  { %v942_v50 = vmul.f32 %v1488_v46, %v940_v48 }
0x1174   :  { %944 = vrot.lane.b32.xlu1 %v942_v50, %s1538_s7 }
0x11e6   :  { %v945_v52 = vpop.permute.xlu1 %944 }
0x11e7   :  { %v947_v53 = vadd.f32 %v945_v52, %v937_v63 }
0x11e9   :  { %1489 = vtanh.f32 %v947_v53 }
0x11f3   :  { %v1490_v40 = vpop.eup %1489 }
0x11f4   :  { %950 = vrot.lane.b32.xlu0 %v1490_v40, %s1532_s14 }
0x1266   :  { %v951_v54 = vpop.permute.xlu0 %950 }
0x1267   :  { %v953_v55 = vmul.f32 %v1488_v46, %v951_v54 }
0x1269   :  { %v954_v56 = vpack.c.bf16 %v953_v55, %v953_v55 }
0x126b   :  { %956 = vrot.lane.b32.xlu1 %v954_v56, %s1538_s7 }
0x12dd   :  { %v957_v58 = vpop.permute.xlu1 %956 }
0x12de   :  { %1401 = vmatmul.mubr.msk.bf16.vlgmr.msra.gmra.mrb[16].mxu1 %vm525_vm4, %v957_v58 }
0x12df   :  { %1416 = vmatprep.mubr.msk.bf16.mxu1 %vm1536_vm2, %v1535_v57  ;;  %1413 = vmatpush3.bf16.msra.mxu1 %v1441_v29 }
0x12e0   :  { %1414 = vmatprep.subr.bf16.mxu1 %v1535_v57 }
0x12e3   :  { %1415 = vmatpush3.bf16.msra.mxu1 %v1442_v30 }
0x13b1   :  { %v995_v59 = vpop.f32.mrb[16].mxu1 }
0x13b2   :  { %v1001_v61 = vadd.f32 %v995_v59, %v1730_v47  ;;  %v1402_v62 = vpop.f32.mrb[17].mxu1 }
0x13b3   :  { %v998_v0 = vpop.f32.mrb[18].mxu1 }
0x13b4   :  { %1491 = vtanh.f32 %v1001_v61  ;;  %v1403_v1 = vpop.f32.mrb[19].mxu1  ;;  %v1239_v3 = vmul.f32 -1.442695, %v1001_v61 }
0x13b6   :  { %1493 = vpow2.f32 %v1239_v3 }
0x13be   :  { %v1492_v2 = vpop.eup %1491 }
0x13bf   :  { %1011 = vrot.lane.b32.xlu0 %v1492_v2, %s1532_s14 }
0x13c0   :  { %v1494_v4 = vpop.eup %1493 }
0x13c1   :  { %v1005_v5 = vadd.f32 1.0, %v1494_v4 }
0x13c3   :  { %1495 = vrcp.f32 %v1005_v5 }
0x13cd   :  { %v1496_v6 = vpop.eup %1495 }
0x13ce   :  { %v1009_v9 = vmul.f32 %v1496_v6, %v947_v53 }
0x1431   :  { %v1012_v7 = vpop.permute.xlu0 %1011 }
0x1432   :  { %v1014_v8 = vmul.f32 %v1496_v6, %v1012_v7 }
0x1434   :  { %1016 = vrot.lane.b32.xlu1 %v1014_v8, %s1538_s7 }
0x14a6   :  { %v1017_v10 = vpop.permute.xlu1 %1016 }
0x14a7   :  { %v1019_v47 = vadd.f32 %v1017_v10, %v1009_v9 }
0x14a9   :  { %1497 = vtanh.f32 %v1019_v47 }
0x14b3   :  { %v1498_v11 = vpop.eup %1497 }
0x14b4   :  { %1022 = vrot.lane.b32.xlu0 %v1498_v11, %s1532_s14 }
0x1526   :  { %v1023_v43 = vpop.permute.xlu0 %1022 }
0x1527   :  { %v1025_v12 = vmul.f32 %v1496_v6, %v1023_v43 }
0x1529   :  { %v1026_v13 = vpack.c.bf16 %v1025_v12, %v1025_v12 }
0x152b   :  { %1028 = vrot.lane.b32.xlu1 %v1026_v13, %s1538_s7 }
0x159d   :  { %v1029_v14 = vpop.permute.xlu1 %1028 }
0x159e   :  { %1409 = vmatmul.mubr.msk.bf16.vlgmr.msra.gmra.mrb[32].mxu0 %vm525_vm4, %v1029_v14 }
0x1671   :  { %v1067_v15 = vpop.f32.mrb[32].mxu0 }
0x1672   :  { %v1073_v16 = vadd.f32 %v1067_v15, %v1734_v51  ;;  %v1410_v17 = vpop.f32.mrb[33].mxu0 }
0x1673   :  { %v1070_v18 = vpop.f32.mrb[34].mxu0 }
0x1674   :  { %1499 = vtanh.f32 %v1073_v16  ;;  %v1411_v19 = vpop.f32.mrb[35].mxu0  ;;  %v1241_v21 = vmul.f32 -1.442695, %v1073_v16 }
0x1676   :  { %1501 = vpow2.f32 %v1241_v21 }
0x167e   :  { %v1500_v20 = vpop.eup %1499 }
0x167f   :  { %1083 = vrot.lane.b32.xlu0 %v1500_v20, %s1532_s14 }
0x1680   :  { %v1502_v22 = vpop.eup %1501 }
0x1681   :  { %v1077_v23 = vadd.f32 1.0, %v1502_v22 }
0x1683   :  { %1503 = vrcp.f32 %v1077_v23 }
0x168d   :  { %v1504_v24 = vpop.eup %1503 }
0x168e   :  { %v1081_v27 = vmul.f32 %v1504_v24, %v1019_v47 }
0x16f1   :  { %v1084_v25 = vpop.permute.xlu0 %1083 }
0x16f2   :  { %v1086_v26 = vmul.f32 %v1504_v24, %v1084_v25 }
0x16f4   :  { %1088 = vrot.lane.b32.xlu1 %v1086_v26, %s1538_s7 }
0x1766   :  { %v1089_v28 = vpop.permute.xlu1 %1088 }
0x1767   :  { %v1091_v51 = vadd.f32 %v1089_v28, %v1081_v27 }
0x1769   :  { %1505 = vtanh.f32 %v1091_v51 }
0x1773   :  { %v1506_v49 = vpop.eup %1505 }
0x1774   :  { %1094 = vrot.lane.b32.xlu0 %v1506_v49, %s1532_s14 }
0x17e6   :  { %v1095_v31 = vpop.permute.xlu0 %1094 }
0x17e7   :  { %v1097_v32 = vmul.f32 %v1504_v24, %v1095_v31 }
0x17e9   :  { %v1098_v33 = vpack.c.bf16 %v1097_v32, %v1097_v32 }
0x17eb   :  { %1111 = vrot.lane.b32.xlu1 %v1098_v33, %s1538_s7 }
0x185d   :  { %v1112_v34 = vpop.permute.xlu1 %1111 }
0x185e   :  { %1417 = vmatmul.mubr.msk.bf16.vlgmr.msra.gmra.mrb[20].mxu1 %vm525_vm4, %v1112_v34 }
0x1931   :  { %v1162_v36 = vpop.f32.mrb[20].mxu1 }
0x1932   :  { %v1163_v37 = vadd.f32 %v1242_v35, %v1162_v36  ;;  %v1418_v38 = vpop.f32.mrb[21].mxu1 }
0x1933   :  { %v1165_v57 = vpop.f32.mrb[22].mxu1 }
0x1934   :  { %v1168_v41 = vmax.f32 %v1163_v37, 0.0  ;;  %v1419_v42 = vpop.f32.mrb[23].mxu1 }
0x1936   :  { %v1176_v44 = vmul.f32 %v1246_v39, %v1168_v41 }
0x1938   :  { %v1177_v60 = vsel %vm525_vm4, %v1176_v44, 0.0 }
0x1939   :  { %1178 = vadd.xlane.f32.xlu0 %v1177_v60 }
0x19c6   :  { %v1179_v46 = vpop.xlane.xlu0 %1178 }
0x19c7   :  { %v1187_v48 = vadd.f32 %v1247_v45, %v1179_v46 }
0x19c9   :  { %1189 = vst.msk [vmem:[%s1844_s12] sm:$0xff] %vm1188_vm5, %v1187_v48 }
0x19ca   :  { %1194 = vsyncpa [#allocation4], 1 }

</bundles_post_ra>
